<compile_context>
chip_gen: v5e
topology: v5e:2x2
jax: 0.10.0
libtpu: 0.0.40
codegen_flags: <defaults>
</compile_context>

<pallas_src>
import functools

import jax
import jax.numpy as jnp
from jax.experimental import pallas as pl
from jax.experimental.pallas import tpu as pltpu

EPS = 1e-8
_LANE = 128
_MAX_CHUNKS = 128            # max statically-unrolled lane chunks per grid step


def _round_up(x, m):
    return ((x + m - 1) // m) * m


def _cdiv(a, b):
    return -(-a // b)


def _vmem_capacity_bytes():
    try:
        cap = getattr(pltpu.get_tpu_info(), "vmem_capacity_bytes", None)
        if cap:
            return int(cap)
    except Exception:
        pass
    return 128 * 1024 * 1024


def _choose_tiles(B, L, itemsize, max_block_l=None):
    """Pick (tb, tl, chunk, vmem_limit).

    tb    : batch tile (small; >= 2 tiles when possible for the v7x megacore)
    tl    : length tile (large; ~4 MiB of input bytes per grid step)
    chunk : in-kernel lane chunk (tb * chunk ~= 4096 f32 elements = 4 vregs)
    """
    sub = {4: 8, 2: 16, 1: 32}.get(itemsize, 8)   # packed sublane multiple

    # Generation-aware VMEM budget: v7x has 64 MiB / TC, v5e/v6e have 128 MiB.
    if _vmem_capacity_bytes() <= 80 * 1024 * 1024:
        budget, limit = 20 << 20, 32 << 20
    else:
        budget, limit = 36 << 20, 64 << 20

    B_r = _round_up(B, sub)
    if B_r >= 2 * sub:
        tb = _round_up(_cdiv(B_r, 2), sub)        # guarantee >= 2 batch tiles
    else:
        tb = B_r
    tb = int(min(max(tb, sub), 32))               # keep tb small; length carries volume

    chunk = max(_LANE, ((4096 // tb) // _LANE) * _LANE)

    # Length tile: fill the VMEM budget (2 inputs x 2 pipeline buffers), capped
    # by the static-unroll limit and by the (chunk-rounded) true length.
    tl_budget = (budget // (4 * tb * itemsize)) // chunk * chunk
    tl_unroll = _MAX_CHUNKS * chunk
    tl = min(tl_budget, tl_unroll, _round_up(L, chunk))
    if max_block_l is not None:                   # test hook: force multi-block path
        tl = min(tl, max(chunk, (max_block_l // chunk) * chunk))
    tl = max(chunk, tl)
    return tb, tl, chunk, limit


def _accum_chunks(s1_ref, s2_ref, refs, tb, chunk, n_chunks, valid_len):
    """Accumulate per-row sufficient statistics over `n_chunks` lane chunks.

    Partial sums are carried in vregs across the (statically unrolled) chunk
    loop and folded into the lane-dense VMEM scratch once per grid step.
    Lanes at or beyond `valid_len` (a static Python int) are masked to zero,
    so ragged edge blocks never pollute the statistics.
    """
    acc1, acc2, a11, a22, a12 = refs
    z = jnp.zeros((tb, chunk), jnp.float32)
    p1, p2, q11, q22, q12 = z, z, z, z, z
    iota = None
    for c in range(n_chunks):
        off = c * chunk
        x1 = s1_ref[:, off:off + chunk].astype(jnp.float32)
        x2 = s2_ref[:, off:off + chunk].astype(jnp.float32)
        if off + chunk > valid_len:               # static tail check
            if iota is None:
                iota = jax.lax.broadcasted_iota(jnp.int32, (tb, chunk), 1)
            keep = iota < (valid_len - off)
            x1 = jnp.where(keep, x1, 0.0)
            x2 = jnp.where(keep, x2, 0.0)
        p1 = p1 + x1
        p2 = p2 + x2
        q11 = q11 + x1 * x1
        q22 = q22 + x2 * x2
        q12 = q12 + x1 * x2
    acc1[...] += p1
    acc2[...] += p2
    a11[...] += q11
    a22[...] += q22
    a12[...] += q12


def _sdr_loss_kernel(s1_ref, s2_ref, out_ref,
                     acc1, acc2, a11, a22, a12, *,
                     length, block_l, chunk, n_l, scaled, scale_dependent,
                     zero_mean, sdr_max, eps):
    j = pl.program_id(1)
    tb = acc1.shape[0]
    refs = (acc1, acc2, a11, a22, a12)

    @pl.when(j == 0)
    def _():
        for r in refs:
            r[...] = jnp.zeros_like(r)

    tail = length - (n_l - 1) * block_l           # valid lanes in last length block
    if n_l == 1:
        _accum_chunks(s1_ref, s2_ref, refs, tb, chunk, _cdiv(tail, chunk), tail)
    elif tail == block_l:                         # length divides evenly: no masking
        _accum_chunks(s1_ref, s2_ref, refs, tb, chunk, block_l // chunk, block_l)
    else:
        @pl.when(j < n_l - 1)
        def _():
            _accum_chunks(s1_ref, s2_ref, refs, tb, chunk,
                          block_l // chunk, block_l)

        @pl.when(j == n_l - 1)
        def _():
            _accum_chunks(s1_ref, s2_ref, refs, tb, chunk,
                          _cdiv(tail, chunk), tail)

    @pl.when(j == n_l - 1)
    def _():
        # Cross-lane (XLU) reduction of the lane-dense accumulators and the
        # scalar epilogue run once per batch tile.
        S1 = jnp.sum(acc1[...], axis=-1, keepdims=True)
        S2 = jnp.sum(acc2[...], axis=-1, keepdims=True)
        P11 = jnp.sum(a11[...], axis=-1, keepdims=True)
        P22 = jnp.sum(a22[...], axis=-1, keepdims=True)
        P12 = jnp.sum(a12[...], axis=-1, keepdims=True)

        # TODO(synk): central moments via p - S^2/L can cancel catastrophically
        # for signals with a huge DC offset; use a compensated accumulator if
        # such inputs matter.
        if zero_mean:
            inv_len = jnp.float32(1.0 / length)
            c11 = P11 - S1 * S1 * inv_len
            c22 = P22 - S2 * S2 * inv_len
            c12 = P12 - S1 * S2 * inv_len
        else:
            c11, c22, c12 = P11, P22, P12

        if scaled:
            alpha = c12 / (c22 + eps)
            target_norm = alpha * alpha * c22     # ||alpha * s2||^2
        else:
            target_norm = c22                     # ||s2||^2

        if scale_dependent or not scaled:
            noise_norm = c11 - 2.0 * c12 + c22    # ||s1 - s2||^2
        else:
            noise_norm = c11 - 2.0 * alpha * c12 + alpha * alpha * c22

        if sdr_max is not None:
            tau = 10.0 ** (-float(sdr_max) / 10.0)
            noise_norm = noise_norm + tau * target_norm

        snr = 10.0 * jnp.log10(target_norm / (noise_norm + eps) + eps)
        out_ref[...] = -snr                       # (tb, 1)


def sdr_loss_pallas(s1, s2, *, scaled=True, scale_dependent=False,
                    zero_mean=True, sdr_max=None, eps=EPS, reduction=True,
                    max_block_l=None):
    """SDRLoss().forward(s1, s2) for 2-D (batch, length) inputs.

    Supports the scaled / scale_dependent / zero_mean / sdr_max / reduction
    flags; bf16 inputs are upcast to f32 inside the kernel.
    """
    # TODO(synk): inactive_labels / threshold branches are data-dependent
    # (boolean gather + dynamic concat) and are not expressed in the kernel.
    # TODO(synk): source_aggregated mode needs 3-D (N, S, L) inputs; not implemented.
    assert s1.ndim == 2 and s1.shape == s2.shape, "need input shape (batch, length)"
    B, L = s1.shape
    itemsize = jnp.dtype(s1.dtype).itemsize
    tb, tl, chunk, vmem_limit = _choose_tiles(B, L, itemsize, max_block_l)
    n_b = _cdiv(B, tb)
    n_l = _cdiv(L, tl)

    kernel = functools.partial(
        _sdr_loss_kernel,
        length=L, block_l=tl, chunk=chunk, n_l=n_l,
        scaled=scaled, scale_dependent=scale_dependent,
        zero_mean=zero_mean, sdr_max=sdr_max, eps=eps,
    )

    neg_snr = pl.pallas_call(
        kernel,
        out_shape=jax.ShapeDtypeStruct((n_b * tb, 1), jnp.float32),
        grid_spec=pltpu.PrefetchScalarGridSpec(
            num_scalar_prefetch=0,
            grid=(n_b, n_l),
            in_specs=[
                pl.BlockSpec((tb, tl), lambda i, j: (i, j)),
                pl.BlockSpec((tb, tl), lambda i, j: (i, j)),
            ],
            out_specs=pl.BlockSpec((tb, 1), lambda i, j: (i, 0)),
            scratch_shapes=[pltpu.VMEM((tb, chunk), jnp.float32)
                            for _ in range(5)],
        ),
        compiler_params=pltpu.CompilerParams(
            dimension_semantics=("parallel", "arbitrary"),
            vmem_limit_bytes=vmem_limit,
        ),
    )(s1, s2)

    neg_snr = neg_snr[:B]                          # drop ragged batch rows -> (B, 1)
    if reduction:
        return jnp.mean(neg_snr)
    return neg_snr


def sdr_loss_ref(s1, s2, *, scaled=True, scale_dependent=False, zero_mean=True,
                 sdr_max=None, eps=EPS, reduction=True):
    """Pure-JAX reference mirroring the PyTorch forward (no inactive/threshold)."""
    s1 = s1.astype(jnp.float32)
    s2 = s2.astype(jnp.float32)
    if zero_mean:
        s1 = s1 - jnp.mean(s1, axis=-1, keepdims=True)
        s2 = s2 - jnp.mean(s2, axis=-1, keepdims=True)
    s1_s2 = jnp.sum(s1 * s2, axis=-1, keepdims=True)
    s2_s2 = jnp.sum(s2 * s2, axis=-1, keepdims=True)
    s_target = (s1_s2 / (s2_s2 + eps)) * s2 if scaled else s2
    e_noise = s1 - (s_target if not scale_dependent else s2)
    tn = jnp.sum(s_target * s_target, axis=-1, keepdims=True)
    nn_ = jnp.sum(e_noise * e_noise, axis=-1, keepdims=True)
    if sdr_max is not None:
        nn_ = nn_ + (10.0 ** (-float(sdr_max) / 10.0)) * tn
    snr = -10.0 * jnp.log10(tn / (nn_ + eps) + eps)
    if reduction:
        return jnp.mean(snr)
    return snr


if __name__ == "__main__":
    key = jax.random.PRNGKey(0)
    k1, k2, k3, k4, k5, k6 = jax.random.split(key, 6)

    # aligned small case (two batch tiles exercise the "parallel" axis)
    B, L = 16, 256
    s2 = jax.random.normal(k1, (B, L), dtype=jnp.float32)              # reference
    s1 = s2 + 0.3 * jax.random.normal(k2, (B, L), dtype=jnp.float32)   # enhanced
    loss = sdr_loss_pallas(s1, s2)
    jax.block_until_ready(loss)
    ref = sdr_loss_ref(s1, s2)
    assert jnp.allclose(loss, ref, rtol=1e-3, atol=1e-3), (loss, ref)

    # unaligned batch & length (ragged edge blocks + in-kernel tail masking)
    B2, L2 = 6, 200
    t2 = jax.random.normal(k3, (B2, L2), dtype=jnp.float32)
    t1 = t2 + 0.5 * jax.random.normal(k4, (B2, L2), dtype=jnp.float32)
    loss2 = sdr_loss_pallas(t1, t2)
    jax.block_until_ready(loss2)
    ref2 = sdr_loss_ref(t1, t2)
    assert jnp.allclose(loss2, ref2, rtol=1e-3, atol=1e-3), (loss2, ref2)

    # multi length-block accumulation path (small block forced for testing)
    B3, L3 = 4, 3000
    u2 = jax.random.normal(k5, (B3, L3), dtype=jnp.float32)
    u1 = u2 + 0.2 * jax.random.normal(k6, (B3, L3), dtype=jnp.float32)
    loss3 = sdr_loss_pallas(u1, u2, max_block_l=1024, reduction=False)
    jax.block_until_ready(loss3)
    ref3 = sdr_loss_ref(u1, u2, reduction=False)
    assert jnp.allclose(loss3, ref3, rtol=1e-3, atol=1e-3), (loss3, ref3)

    print("KERNEL_OK")
</pallas_src>

<mosaic_0001>
module attributes {stable_mosaic.version = 11 : i64} {
  func.func @_sdr_loss_kernel(%arg0: i32, %arg1: i32, %arg2: memref<8x512xf32, #tpu.memory_space<vmem>>, %arg3: memref<8x512xf32, #tpu.memory_space<vmem>>, %arg4: memref<8x1xf32, #tpu.memory_space<vmem>>, %arg5: memref<8x512xf32, #tpu.memory_space<vmem>>, %arg6: memref<8x512xf32, #tpu.memory_space<vmem>>, %arg7: memref<8x512xf32, #tpu.memory_space<vmem>>, %arg8: memref<8x512xf32, #tpu.memory_space<vmem>>, %arg9: memref<8x512xf32, #tpu.memory_space<vmem>>) attributes {dimension_semantics = [#tpu.dimension_semantics<parallel>, #tpu.dimension_semantics<arbitrary>], iteration_bounds = array<i64: 2, 1>, scalar_prefetch = 0 : i64, scratch_operands = 5 : i64, tpu.core_type = #tpu.core_type<tc>, window_params = [{transform_indices = @transform_0, window_bounds = array<i64: 8, 512>}, {transform_indices = @transform_1, window_bounds = array<i64: 8, 512>}, {transform_indices = @transform_2, window_bounds = array<i64: 8, 1>}]} {
    %c0_i32 = arith.constant 0 : i32
    %0 = arith.cmpi eq, %arg1, %c0_i32 : i32
    %1 = arith.extui %0 : i1 to i32
    %c0_i32_0 = arith.constant 0 : i32
    %2 = arith.cmpi ne, %1, %c0_i32_0 : i32
    scf.if %2 {
      %cst_28 = arith.constant 0.000000e+00 : f32
      %39 = vector.broadcast %cst_28 : f32 to vector<8x512xf32>
      %c0_29 = arith.constant 0 : index
      %c0_30 = arith.constant 0 : index
      %40 = vector.load %arg5[%c0_29, %c0_30] : memref<8x512xf32, #tpu.memory_space<vmem>>, vector<8x512xf32>
      tpu.vector_store %arg5[%c0_29, %c0_30], %39 {strides = array<i32>} : memref<8x512xf32, #tpu.memory_space<vmem>>, vector<8x512xf32>,
      %cst_31 = arith.constant 0.000000e+00 : f32
      %41 = vector.broadcast %cst_31 : f32 to vector<8x512xf32>
      %c0_32 = arith.constant 0 : index
      %c0_33 = arith.constant 0 : index
      %42 = vector.load %arg6[%c0_32, %c0_33] : memref<8x512xf32, #tpu.memory_space<vmem>>, vector<8x512xf32>
      tpu.vector_store %arg6[%c0_32, %c0_33], %41 {strides = array<i32>} : memref<8x512xf32, #tpu.memory_space<vmem>>, vector<8x512xf32>,
      %cst_34 = arith.constant 0.000000e+00 : f32
      %43 = vector.broadcast %cst_34 : f32 to vector<8x512xf32>
      %c0_35 = arith.constant 0 : index
      %c0_36 = arith.constant 0 : index
      %44 = vector.load %arg7[%c0_35, %c0_36] : memref<8x512xf32, #tpu.memory_space<vmem>>, vector<8x512xf32>
      tpu.vector_store %arg7[%c0_35, %c0_36], %43 {strides = array<i32>} : memref<8x512xf32, #tpu.memory_space<vmem>>, vector<8x512xf32>,
      %cst_37 = arith.constant 0.000000e+00 : f32
      %45 = vector.broadcast %cst_37 : f32 to vector<8x512xf32>
      %c0_38 = arith.constant 0 : index
      %c0_39 = arith.constant 0 : index
      %46 = vector.load %arg8[%c0_38, %c0_39] : memref<8x512xf32, #tpu.memory_space<vmem>>, vector<8x512xf32>
      tpu.vector_store %arg8[%c0_38, %c0_39], %45 {strides = array<i32>} : memref<8x512xf32, #tpu.memory_space<vmem>>, vector<8x512xf32>,
      %cst_40 = arith.constant 0.000000e+00 : f32
      %47 = vector.broadcast %cst_40 : f32 to vector<8x512xf32>
      %c0_41 = arith.constant 0 : index
      %c0_42 = arith.constant 0 : index
      %48 = vector.load %arg9[%c0_41, %c0_42] : memref<8x512xf32, #tpu.memory_space<vmem>>, vector<8x512xf32>
      tpu.vector_store %arg9[%c0_41, %c0_42], %47 {strides = array<i32>} : memref<8x512xf32, #tpu.memory_space<vmem>>, vector<8x512xf32>,
    } else {
    }
    %cst = arith.constant 0.000000e+00 : f32
    %3 = vector.broadcast %cst : f32 to vector<8x512xf32>
    %c0 = arith.constant 0 : index
    %c0_1 = arith.constant 0 : index
    %4 = vector.load %arg2[%c0, %c0_1] : memref<8x512xf32, #tpu.memory_space<vmem>>, vector<8x512xf32>
    %c0_2 = arith.constant 0 : index
    %c0_3 = arith.constant 0 : index
    %5 = vector.load %arg3[%c0_2, %c0_3] : memref<8x512xf32, #tpu.memory_space<vmem>>, vector<8x512xf32>
    %6 = tpu.iota {dimensions = array<i32: 1>} : vector<8x512xi32>
    %c256_i32 = arith.constant 256 : i32
    %7 = vector.broadcast %c256_i32 : i32 to vector<8x512xi32>
    %8 = arith.cmpi slt, %6, %7 : vector<8x512xi32>
    %cst_4 = arith.constant 0.000000e+00 : f32
    %9 = vector.broadcast %cst_4 : f32 to vector<8x512xf32>
    %10 = arith.select %8, %4, %9 : vector<8x512xi1>, vector<8x512xf32>
    %cst_5 = arith.constant 0.000000e+00 : f32
    %11 = vector.broadcast %cst_5 : f32 to vector<8x512xf32>
    %12 = arith.select %8, %5, %11 : vector<8x512xi1>, vector<8x512xf32>
    %13 = arith.addf %3, %10 : vector<8x512xf32>
    %14 = arith.addf %3, %12 : vector<8x512xf32>
    %15 = arith.mulf %10, %10 : vector<8x512xf32>
    %16 = arith.addf %3, %15 : vector<8x512xf32>
    %17 = arith.mulf %12, %12 : vector<8x512xf32>
    %18 = arith.addf %3, %17 : vector<8x512xf32>
    %19 = arith.mulf %10, %12 : vector<8x512xf32>
    %20 = arith.addf %3, %19 : vector<8x512xf32>
    %c0_6 = arith.constant 0 : index
    %c0_7 = arith.constant 0 : index
    %21 = vector.load %arg5[%c0_6, %c0_7] : memref<8x512xf32, #tpu.memory_space<vmem>>, vector<8x512xf32>
    %22 = arith.addf %21, %13 : vector<8x512xf32>
    %c0_8 = arith.constant 0 : index
    %c0_9 = arith.constant 0 : index
    %23 = vector.load %arg5[%c0_8, %c0_9] : memref<8x512xf32, #tpu.memory_space<vmem>>, vector<8x512xf32>
    tpu.vector_store %arg5[%c0_8, %c0_9], %22 {strides = array<i32>} : memref<8x512xf32, #tpu.memory_space<vmem>>, vector<8x512xf32>,
    %c0_10 = arith.constant 0 : index
    %c0_11 = arith.constant 0 : index
    %24 = vector.load %arg6[%c0_10, %c0_11] : memref<8x512xf32, #tpu.memory_space<vmem>>, vector<8x512xf32>
    %25 = arith.addf %24, %14 : vector<8x512xf32>
    %c0_12 = arith.constant 0 : index
    %c0_13 = arith.constant 0 : index
    %26 = vector.load %arg6[%c0_12, %c0_13] : memref<8x512xf32, #tpu.memory_space<vmem>>, vector<8x512xf32>
    tpu.vector_store %arg6[%c0_12, %c0_13], %25 {strides = array<i32>} : memref<8x512xf32, #tpu.memory_space<vmem>>, vector<8x512xf32>,
    %c0_14 = arith.constant 0 : index
    %c0_15 = arith.constant 0 : index
    %27 = vector.load %arg7[%c0_14, %c0_15] : memref<8x512xf32, #tpu.memory_space<vmem>>, vector<8x512xf32>
    %28 = arith.addf %27, %16 : vector<8x512xf32>
    %c0_16 = arith.constant 0 : index
    %c0_17 = arith.constant 0 : index
    %29 = vector.load %arg7[%c0_16, %c0_17] : memref<8x512xf32, #tpu.memory_space<vmem>>, vector<8x512xf32>
    tpu.vector_store %arg7[%c0_16, %c0_17], %28 {strides = array<i32>} : memref<8x512xf32, #tpu.memory_space<vmem>>, vector<8x512xf32>,
    %c0_18 = arith.constant 0 : index
    %c0_19 = arith.constant 0 : index
    %30 = vector.load %arg8[%c0_18, %c0_19] : memref<8x512xf32, #tpu.memory_space<vmem>>, vector<8x512xf32>
    %31 = arith.addf %30, %18 : vector<8x512xf32>
    %c0_20 = arith.constant 0 : index
    %c0_21 = arith.constant 0 : index
    %32 = vector.load %arg8[%c0_20, %c0_21] : memref<8x512xf32, #tpu.memory_space<vmem>>, vector<8x512xf32>
    tpu.vector_store %arg8[%c0_20, %c0_21], %31 {strides = array<i32>} : memref<8x512xf32, #tpu.memory_space<vmem>>, vector<8x512xf32>,
    %c0_22 = arith.constant 0 : index
    %c0_23 = arith.constant 0 : index
    %33 = vector.load %arg9[%c0_22, %c0_23] : memref<8x512xf32, #tpu.memory_space<vmem>>, vector<8x512xf32>
    %34 = arith.addf %33, %20 : vector<8x512xf32>
    %c0_24 = arith.constant 0 : index
    %c0_25 = arith.constant 0 : index
    %35 = vector.load %arg9[%c0_24, %c0_25] : memref<8x512xf32, #tpu.memory_space<vmem>>, vector<8x512xf32>
    tpu.vector_store %arg9[%c0_24, %c0_25], %34 {strides = array<i32>} : memref<8x512xf32, #tpu.memory_space<vmem>>, vector<8x512xf32>,
    %c0_i32_26 = arith.constant 0 : i32
    %36 = arith.cmpi eq, %arg1, %c0_i32_26 : i32
    %37 = arith.extui %36 : i1 to i32
    %c0_i32_27 = arith.constant 0 : i32
    %38 = arith.cmpi ne, %37, %c0_i32_27 : i32
    scf.if %38 {
      %c0_28 = arith.constant 0 : index
      %c0_29 = arith.constant 0 : index
      %39 = vector.load %arg5[%c0_28, %c0_29] : memref<8x512xf32, #tpu.memory_space<vmem>>, vector<8x512xf32>
      %cst_30 = arith.constant dense<0.000000e+00> : vector<8xf32>
      %40 = vector.multi_reduction <add>, %39, %cst_30 [1] : vector<8x512xf32> to vector<8xf32>
      %41 = vector.shape_cast %40 : vector<8xf32> to vector<8x1xf32>
      %c0_31 = arith.constant 0 : index
      %c0_32 = arith.constant 0 : index
      %42 = vector.load %arg6[%c0_31, %c0_32] : memref<8x512xf32, #tpu.memory_space<vmem>>, vector<8x512xf32>
      %cst_33 = arith.constant dense<0.000000e+00> : vector<8xf32>
      %43 = vector.multi_reduction <add>, %42, %cst_33 [1] : vector<8x512xf32> to vector<8xf32>
      %44 = vector.shape_cast %43 : vector<8xf32> to vector<8x1xf32>
      %c0_34 = arith.constant 0 : index
      %c0_35 = arith.constant 0 : index
      %45 = vector.load %arg7[%c0_34, %c0_35] : memref<8x512xf32, #tpu.memory_space<vmem>>, vector<8x512xf32>
      %cst_36 = arith.constant dense<0.000000e+00> : vector<8xf32>
      %46 = vector.multi_reduction <add>, %45, %cst_36 [1] : vector<8x512xf32> to vector<8xf32>
      %47 = vector.shape_cast %46 : vector<8xf32> to vector<8x1xf32>
      %c0_37 = arith.constant 0 : index
      %c0_38 = arith.constant 0 : index
      %48 = vector.load %arg8[%c0_37, %c0_38] : memref<8x512xf32, #tpu.memory_space<vmem>>, vector<8x512xf32>
      %cst_39 = arith.constant dense<0.000000e+00> : vector<8xf32>
      %49 = vector.multi_reduction <add>, %48, %cst_39 [1] : vector<8x512xf32> to vector<8xf32>
      %50 = vector.shape_cast %49 : vector<8xf32> to vector<8x1xf32>
      %c0_40 = arith.constant 0 : index
      %c0_41 = arith.constant 0 : index
      %51 = vector.load %arg9[%c0_40, %c0_41] : memref<8x512xf32, #tpu.memory_space<vmem>>, vector<8x512xf32>
      %cst_42 = arith.constant dense<0.000000e+00> : vector<8xf32>
      %52 = vector.multi_reduction <add>, %51, %cst_42 [1] : vector<8x512xf32> to vector<8xf32>
      %53 = vector.shape_cast %52 : vector<8xf32> to vector<8x1xf32>
      %54 = arith.mulf %41, %41 : vector<8x1xf32>
      %cst_43 = arith.constant 3.906250e-03 : f32
      %55 = vector.broadcast %cst_43 : f32 to vector<8x1xf32>
      %56 = arith.mulf %54, %55 : vector<8x1xf32>
      %57 = arith.subf %47, %56 : vector<8x1xf32>
      %58 = arith.mulf %44, %44 : vector<8x1xf32>
      %cst_44 = arith.constant 3.906250e-03 : f32
      %59 = vector.broadcast %cst_44 : f32 to vector<8x1xf32>
      %60 = arith.mulf %58, %59 : vector<8x1xf32>
      %61 = arith.subf %50, %60 : vector<8x1xf32>
      %62 = arith.mulf %41, %44 : vector<8x1xf32>
      %cst_45 = arith.constant 3.906250e-03 : f32
      %63 = vector.broadcast %cst_45 : f32 to vector<8x1xf32>
      %64 = arith.mulf %62, %63 : vector<8x1xf32>
      %65 = arith.subf %53, %64 : vector<8x1xf32>
      %cst_46 = arith.constant 9.99999993E-9 : f32
      %66 = vector.broadcast %cst_46 : f32 to vector<8x1xf32>
      %67 = arith.addf %61, %66 : vector<8x1xf32>
      %68 = arith.divf %65, %67 : vector<8x1xf32>
      %69 = arith.mulf %68, %68 : vector<8x1xf32>
      %70 = arith.mulf %69, %61 : vector<8x1xf32>
      %cst_47 = arith.constant 2.000000e+00 : f32
      %71 = vector.broadcast %cst_47 : f32 to vector<8x1xf32>
      %72 = arith.mulf %71, %68 : vector<8x1xf32>
      %73 = arith.mulf %72, %65 : vector<8x1xf32>
      %74 = arith.subf %57, %73 : vector<8x1xf32>
      %75 = arith.mulf %68, %68 : vector<8x1xf32>
      %76 = arith.mulf %75, %61 : vector<8x1xf32>
      %77 = arith.addf %74, %76 : vector<8x1xf32>
      %cst_48 = arith.constant 9.99999993E-9 : f32
      %78 = vector.broadcast %cst_48 : f32 to vector<8x1xf32>
      %79 = arith.addf %77, %78 : vector<8x1xf32>
      %80 = arith.divf %70, %79 : vector<8x1xf32>
      %cst_49 = arith.constant 9.99999993E-9 : f32
      %81 = vector.broadcast %cst_49 : f32 to vector<8x1xf32>
      %82 = arith.addf %80, %81 : vector<8x1xf32>
      %83 = math.log %82 : vector<8x1xf32>
      %cst_50 = arith.constant 0.434294492 : f32
      %84 = vector.broadcast %cst_50 : f32 to vector<8x1xf32>
      %85 = arith.mulf %83, %84 : vector<8x1xf32>
      %cst_51 = arith.constant 1.000000e+01 : f32
      %86 = vector.broadcast %cst_51 : f32 to vector<8x1xf32>
      %87 = arith.mulf %86, %85 : vector<8x1xf32>
      %cst_52 = arith.constant 0.000000e+00 : f32
      %88 = vector.broadcast %cst_52 : f32 to vector<8x1xf32>
      %89 = arith.subf %88, %87 : vector<8x1xf32>
      %c0_53 = arith.constant 0 : index
      %c0_54 = arith.constant 0 : index
      %90 = vector.load %arg4[%c0_53, %c0_54] : memref<8x1xf32, #tpu.memory_space<vmem>>, vector<8x1xf32>
      tpu.vector_store %arg4[%c0_53, %c0_54], %89 {strides = array<i32>} : memref<8x1xf32, #tpu.memory_space<vmem>>, vector<8x1xf32>,
    } else {
    }
    return
  }
  func.func @transform_0(%arg0: i32, %arg1: i32) -> (i32, i32) {
    %c0_i32 = arith.constant 0 : i32
    return %arg0, %arg1 : i32, i32
  }
  func.func @transform_1(%arg0: i32, %arg1: i32) -> (i32, i32) {
    %c0_i32 = arith.constant 0 : i32
    return %arg0, %arg1 : i32, i32
  }
  func.func @transform_2(%arg0: i32, %arg1: i32) -> (i32, i32) {
    %c0_i32 = arith.constant 0 : i32
    %c0_i32_0 = arith.constant 0 : i32
    return %arg0, %c0_i32 : i32, i32
  }
}

</mosaic_0001>

<bundles_post_ra>
// kernel: tpu_custom_call.1
= control target key start
LH: loop header
LB: loop body
LE: loop exit
PB: predicated region body
PF: predicated region fallthrough
CT: control target
= control target key end

     0   :  { %7 = vsyncpa [#allocation8], 0  ;;  %s876_s0 = inlined_call_operand.hbm [shape: f32[16,256], index: 0, kind: input, shape index: {}]   ;;  %s877_s1 = inlined_call_operand.hbm [shape: f32[16,256], index: 1, kind: input, shape index: {}]   ;;  %s878_s2 = inlined_call_operand.vmem [shape: f32[16,1], index: 2, kind: output, shape index: {}]  }
   0x1   :  { %9 = vsyncpa [#allocation8 + $0x1], 0 }
   0x2   :  { %10 = vsyncpa [#allocation10], 0 }
   0x3   :  { %12 = vsyncpa [#allocation10 + $0x1], 0  ;;  %s777_s9 = smov 0   ;;  %s779_s10 = smov 0  }
   0x4   :  { %s781_s11 = smov 0   ;;  %s783_s12 = smov 0  }
   0x5   :  { %s785_s13 = smov 0   ;;  %s787_s14 = smov 0  }
   0x6 LB: > { %s584_s15 = sadd.s32 4294967295, %s760_s14   ;;  %s30_s16 = sadd.s32 1, %s756_s13  ;;  %s760_s14 = sphi %s787_s14, %s18_s14   ;;  %s756_s13 = sphi %s785_s13, %s885_s13   ;;  %s752_s12 = sphi %s783_s12, %s884_s12   ;;  %s748_s11 = sphi %s781_s11, %s883_s11   ;;  %s744_s10 = sphi %s779_s10, %s882_s10   ;;  %s740_s9 = sphi %s777_s9, %s881_s9  }
   0x7   : > { %p32_p0 = scmp.ge.s32.totalorder %s30_s16, 2  ;;  %s39_s17 = sadd.s32 1, %s748_s11 }
   0x8   : > { %p46_p1 = scmp.ne.s32.totalorder %s748_s11, %s744_s10  ;;  %p47_p2 = scmp.eq.s32.totalorder %s760_s14, 0 }
   0x9   : > { %s887_s16 = smov (%p32_p0, %s30_s16), 0  ;;  %p52_p4 = scmp.ne.s32.totalorder %s744_s10, %s740_s9 }
   0xa   : > { %p813_p3 = por %p47_p2, %p46_p1  ;;  %s34_s19 = ssub.s32 %s756_s13, %s887_s16 }
   0xb   : > { %p53_p5 = scmp.eq.s32.totalorder %s584_s15, 0  ;;  %p37_p6 = scmp.eq.s32.totalorder %s34_s19, 0 }
   0xc   : > { %p587_p8 = scmp.ge.s32.totalorder %s760_s14, 2 }
   0xd   : > { %p820_p7 = por %p53_p5, %p52_p4 }
   0xe   : > { %s825_s21 = scalar_select %p37_p6, %s748_s11, %s39_s17  }
   0xf   : > { %126 = sbr.rel (%p587_p8) target bundleno = 38 (0x26), region = 16 }
  0x14   : > { %129 = sbr.rel (!%p813_p3) target bundleno = 29 (0x1d), region = 20  ;;  %s130_s22 = sand.u32 (%p813_p3), 1, %s748_s11  }
  0x15   : > { %s588_s23 = sshll.u32 (%p813_p3), %s130_s22, 5  ;;  %s131_s24 = scalar_lea.sflag (%p813_p3), [#allocation8], %s130_s22 }
  0x16   : > { %s134_s25 = scalar_lea.vmem (%p813_p3), [#allocation7], %s588_s23 }
  0x19   : > { %140 = vsyncadd %s131_s24, 256  ;;  %s600_s26 = sshll.u32 %s756_s13, 4  ;;  %s150_s27 = sshll.u32 %s134_s25, 4  ;;  %s151_s27 = int_to_ptr.vmem [resolvable:$true] %s150_s27 }
  0x1a   : > { %s145_s30 = scalar_lea.hbm %s876_s0, %s600_s26 }
  0x1b   : > { %s148_s3 = sshll.u32 %s145_s30, 4  ;;  %s149_s3 = int_to_ptr.hbm [resolvable:$true] %s148_s3 }
  0x1c   : > { %153 = dma.hbm_to_vmem [thread:$0]  %s149_s3, 256, %s151_s27, %s131_s24  }
  0x1d PF: > { %156 = sbr.rel (!%p813_p3) target bundleno = 38 (0x26), region = 24  ;;  %s157_s4 = sand.u32 (%p813_p3), 1, %s748_s11  }
  0x1e   : > { %s591_s5 = sshll.u32 (%p813_p3), %s157_s4, 5  ;;  %s158_s6 = scalar_lea.sflag (%p813_p3), [#allocation10], %s157_s4 }
  0x1f   : > { %s161_s7 = scalar_lea.vmem (%p813_p3), [#allocation9], %s591_s5 }
  0x22   : > { %167 = vsyncadd %s158_s6, 256  ;;  %s601_s8 = sshll.u32 %s756_s13, 4  ;;  %s177_s9 = sshll.u32 %s161_s7, 4  ;;  %s178_s9 = int_to_ptr.vmem [resolvable:$true] %s177_s9 }
  0x23   : > { %s172_s19 = scalar_lea.hbm %s877_s1, %s601_s8 }
  0x24   : > { %s175_s22 = sshll.u32 %s172_s19, 4  ;;  %s176_s22 = int_to_ptr.hbm [resolvable:$true] %s175_s22 }
  0x25   : > { %180 = dma.hbm_to_vmem [thread:$0]  %s176_s22, 256, %s178_s9, %s158_s6  }
  0x26 PF: > { %p594_p9 = scmp.ge.s32.totalorder %s760_s14, 1  ;;  %p182_p10 = scmp.lt.s32.totalorder %s760_s14, 3 }
  0x28   : > { %p183_p11 = pnand %p594_p9, %p182_p10 }
  0x29   : > { %s188_s18 = sand.u32 (!%p183_p11), 1, %s744_s10  }
  0x2a   : > { %186 = sbr.rel (%p183_p11) target bundleno = 247 (0xf7), region = 28  ;;  %s595_s23 = sshll.u32 (!%p183_p11), %s188_s18, 5 }
  0x2b   : > { %s189_s24 = scalar_lea.sflag (!%p183_p11), [#allocation8], %s188_s18  ;;  %s192_s25 = scalar_lea.vmem (!%p183_p11), [#allocation7], %s595_s23 }
  0x2f   : > { %731 = dma.done.wait (%p820_p7), %s189_s24, 512  }
  0x30   : > { %733 = vsyncadd (%p820_p7), %s189_s24, 4294966784  ;;  %s199_s26 = scalar_lea.sflag [#allocation10], %s188_s18  ;;  %s202_s27 = scalar_lea.vmem [#allocation9], %s595_s23 }
  0x31   : > { %735 = dma.done.wait (%p820_p7), %s199_s26, 512  }
  0x32   : > { %737 = vsyncadd (%p820_p7), %s199_s26, 4294966784  ;;  %v266_v0 = vld [vmem:[%s202_s27] sm:$0xff]  ;;  %v267_v1 = vld [vmem:[%s202_s27 + $0x8] sm:$0xff]  ;;  %p234_p12 = scmp.lt.s32.totalorder %s752_s12, 1  ;;  %vm480_vm8 = vcmask 7168  }
  0x33   : > { %v262_v2 = vld [vmem:[%s192_s25] sm:$0xff]  ;;  %v395_v3 = vadd.f32 %v267_v1, %v266_v0  ;;  %v263_v4 = vld [vmem:[%s192_s25 + $0x8] sm:$0xff]  ;;  %v303_v8 = vmul.f32 %v266_v0, %v266_v0  ;;  %v304_v9 = vmul.f32 %v267_v1, %v267_v1 }
  0x34   : > { %v386_v5 = vadd.f32 %v263_v4, %v262_v2  ;;  %v295_v6 = vmul.f32 %v262_v2, %v262_v2  ;;  %v296_v7 = vmul.f32 %v263_v4, %v263_v4  ;;  %v311_v10 = vmul.f32 %v266_v0, %v262_v2  ;;  %s889_s12 = smov (!%p234_p12, %s752_s12), 1 }
  0x35   : > { %398 = vadd.xlane.f32.xlu0 %v395_v3  ;;  %v312_v11 = vmul.f32 %v267_v1, %v263_v4  ;;  %v413_v13 = vadd.f32 %v304_v9, %v303_v8  ;;  %s597_s20 = sshll.u32 %s889_s12, 3 }
  0x36   : > { %389 = vadd.xlane.f32.xlu1 %v386_v5  ;;  %v404_v12 = vadd.f32 %v296_v7, %v295_v6  ;;  %s237_s30 = scalar_lea.vmem %s878_s2, %s597_s20 }
  0x37   : > { %v422_v14 = vadd.f32 %v312_v11, %v311_v10 }
  0x38   : > { %407 = vadd.xlane.f32.xlu2 %v404_v12 }
  0x3d   : > { %416 = vadd.xlane.f32.xlu0 %v413_v13 }
  0x3e   : > { %425 = vadd.xlane.f32.xlu1 %v422_v14 }
  0xa8   : > { %v399_v15 = vpop.xlane.xlu0 %398 }
  0xa9   : > { %v430_v16 = vmul.f32 %v399_v15, %v399_v15  ;;  %v390_v21 = vpop.xlane.xlu1 %389 }
  0xaa   : > { %v433_v24 = vmul.f32 %v399_v15, %v390_v21  ;;  %v427_v30 = vmul.f32 %v390_v21, %v390_v21 }
  0xab   : > { %v431_v17 = vmul.f32 0.00390625, %v430_v16  ;;  %v408_v39 = vpop.xlane.xlu2 %407 }
  0xac   : > { %v434_v31 = vmul.f32 0.00390625, %v433_v24  ;;  %v428_v37 = vmul.f32 0.00390625, %v427_v30 }
  0xae   : > { %v429_v43 = vsub.f32 %v408_v39, %v428_v37 }
  0xb0   : > { %v417_v18 = vpop.xlane.xlu0 %416 }
  0xb1   : > { %v432_v19 = vsub.f32 %v417_v18, %v431_v17  ;;  %v426_v29 = vpop.xlane.xlu1 %425 }
  0xb2   : > { %v435_v35 = vsub.f32 %v426_v29, %v434_v31 }
  0xb3   : > { %v436_v20 = vadd.f32 1e-08, %v432_v19 }
  0xb5   : > { %652 = vrcp.f32 %v436_v20  ;;  %v448_v26 = vand.u32 2147483648, %v436_v20  ;;  %v446_v28 = vand.u32 2147483647, %v436_v20  ;;  %vm442_vm1 = vweird.f32 %v436_v20 }
  0xb7   : > { %v449_v33 = vor.u32 1.1754944e-38, %v448_v26  ;;  %vm447_vm3 = vcmp.eq.f32.partialorder %v446_v28, 8.507059e+37 }
  0xbb   : > { %v653_v22 = vpop.eup %652 }
  0xbc   : > { %v438_v23 = vmul.f32 %v653_v22, %v436_v20  ;;  %vm443_vm0 = vweird.f32 %v653_v22 }
  0xbd   : > { %vm444_vm2 = vmor %vm442_vm1, %vm443_vm0 }
  0xbe   : > { %v439_v25 = vsub.f32 1.0, %v438_v23 }
  0xc0   : > { %v440_v27 = vmul.f32 %v653_v22, %v439_v25 }
  0xc2   : > { %v441_v32 = vadd.f32 %v653_v22, %v440_v27 }
  0xc4   : > { %v445_v34 = vsel %vm444_vm2, %v653_v22, %v441_v32 }
  0xc5   : > { %v450_v36 = vsel %vm447_vm3, %v449_v33, %v445_v34 }
  0xc6   : > { %v451_v38 = vmul.f32 %v450_v36, %v435_v35 }
  0xc8   : > { %v452_v40 = vmul.f32 %v451_v38, %v451_v38  ;;  %v454_v41 = vmul.f32 2.0, %v451_v38 }
  0xca   : > { %v455_v42 = vmul.f32 %v454_v41, %v435_v35  ;;  %v453_v44 = vmul.f32 %v452_v40, %v432_v19 }
  0xcc   : > { %v456_v45 = vsub.f32 %v429_v43, %v455_v42 }
  0xce   : > { %v457_v46 = vadd.f32 %v456_v45, %v453_v44 }
  0xd0   : > { %v458_v47 = vadd.f32 1e-08, %v457_v46 }
  0xd2   : > { %654 = vrcp.f32 %v458_v47  ;;  %v470_v51 = vand.u32 2147483648, %v458_v47  ;;  %v468_v53 = vand.u32 2147483647, %v458_v47  ;;  %vm464_vm5 = vweird.f32 %v458_v47 }
  0xd4   : > { %v471_v55 = vor.u32 1.1754944e-38, %v470_v51  ;;  %vm469_vm7 = vcmp.eq.f32.partialorder %v468_v53, 8.507059e+37 }
  0xd8   : > { %v655_v48 = vpop.eup %654 }
  0xd9   : > { %v460_v49 = vmul.f32 %v655_v48, %v458_v47  ;;  %vm465_vm4 = vweird.f32 %v655_v48 }
  0xda   : > { %vm466_vm6 = vmor %vm464_vm5, %vm465_vm4 }
  0xdb   : > { %v461_v50 = vsub.f32 1.0, %v460_v49 }
  0xdd   : > { %v462_v52 = vmul.f32 %v655_v48, %v461_v50 }
  0xdf   : > { %v463_v54 = vadd.f32 %v655_v48, %v462_v52 }
  0xe1   : > { %v467_v56 = vsel %vm466_vm6, %v655_v48, %v463_v54 }
  0xe2   : > { %v472_v57 = vsel %vm469_vm7, %v471_v55, %v467_v56 }
  0xe3   : > { %v473_v58 = vmul.f32 %v472_v57, %v453_v44 }
  0xe5   : > { %v474_v59 = vadd.f32 1e-08, %v473_v58 }
  0xe7   : > { %656 = vlog2.f32 %v474_v59 }
  0xed   : > { %v657_v60 = vpop.eup %656 }
  0xee   : > { %v476_v61 = vmul.f32 0.6931472, %v657_v60 }
  0xf0   : > { %v477_v62 = vmul.f32 0.4342945, %v476_v61 }
  0xf2   : > { %v478_v63 = vmul.f32 10.0, %v477_v62 }
  0xf4   : > { %v479_v0 = vsub.f32 0.0, %v478_v63 }
  0xf6   : > { %481 = vst.msk [vmem:[%s237_s30] sm:$0xff] %vm480_vm8, %v479_v0 }
  0xf7 PF: > { %s18_s14 = sadd.s32 1, %s760_s14   ;;  %s881_s9 = smov %s744_s10 }
  0xf8   : > { %p15_p13 = scmp.ge.s32.totalorder %s18_s14, 4   ;;  %s882_s10 = smov %s748_s11 }
  0xf9   : > { %s883_s11 = smov %s825_s21  ;;  %s884_s12 = smov %s756_s13 }
  0xfa   : > { %s885_s13 = smov %s887_s16  ;;  %17 = sbr.rel (!%p15_p13) target bundleno = 6 (0x6), region = 89 }
  0xff   :  { %501 = vsyncpa [#allocation8], 1 }
 0x100   :  { %503 = vsyncpa [#allocation8 + $0x1], 1 }
 0x101   :  { %504 = vsyncpa [#allocation10], 1 }
 0x102   :  { %506 = vsyncpa [#allocation10 + $0x1], 1 }

</bundles_post_ra>
